<compile_context>
chip_gen: v7x
topology: tpu7x:2x2x1
jax: 0.10.0
libtpu: 0.0.40
codegen_flags: <defaults>
</compile_context>

<pallas_src>
import jax
import jax.numpy as jnp
from jax.experimental import pallas as pl
from jax.experimental.pallas import tpu as pltpu


def _group_xyz_kernel(xyz_ref, gxyz_ref):
    # xyz_ref:  (TB, TN, 3) tile of the (B, N_pad, 3) input
    # gxyz_ref: (TB, 3, TN) tile of the (B, 3, N_pad) output (lane-dense stores)
    tb = xyz_ref.shape[0]
    for b in range(tb):  # static unroll, TB <= 8
        gxyz_ref[b] = xyz_ref[b].T


def _largest_aligned_divisor(n_pad, cap):
    """Largest multiple of 128 that divides n_pad and is <= cap (>= 128)."""
    best = 128
    t = 128
    limit = min(n_pad, cap)
    while t <= limit:
        if n_pad % t == 0:
            best = t
        t += 128
    return best


def _pick_tiles(B, n_pad, row_budget=8192, max_tb=8):
    """Pick (TB, TN): TB | B, TN | n_pad, TN % 128 == 0, TB*TN <= row_budget.

    row_budget bounds the lane-padded VMEM landing buffer of the input block
    (TB*TN rows * 128 lanes * 4 B ~= 4 MiB at 8192 rows, double-buffered).
    Also tries to keep >= 2 total grid steps so both v7x TensorCores get work.
    """
    tb = 1
    for d in range(2, min(B, max_tb) + 1):
        if B % d == 0:
            tb = d
    tn = _largest_aligned_divisor(n_pad, row_budget // tb)
    if (B // tb) * (n_pad // tn) < 2:
        if n_pad // 128 >= 2:
            tn = _largest_aligned_divisor(n_pad, tn - 128)
        elif tb > 1:
            smaller = [d for d in range(1, tb) if B % d == 0]
            tb = smaller[-1] if smaller else 1
    return tb, tn


def group_all(new_xyz, xyz, features=None):
    """
    :param new_xyz: ignored (kept for API parity with the PyTorch module)
    :param xyz:      (B, N, 3) float array
    :param features: (B, C, N) float array or None
    :return: (grouped_xyz (B, 3, 1, N), grouped_features (B, C, 1, N) or None)
    """
    del new_xyz  # ignored, same as the PyTorch module
    B, N, three = xyz.shape
    assert three == 3

    # Pad N up to a multiple of 128 (lane width) so every tile is lane-aligned.
    n_pad = ((N + 127) // 128) * 128
    xyz_p = xyz if n_pad == N else jnp.pad(xyz, ((0, 0), (0, n_pad - N), (0, 0)))

    TB, TN = _pick_tiles(B, n_pad)
    grid = (B // TB, n_pad // TN)

    gxyz_p = pl.pallas_call(
        _group_xyz_kernel,
        out_shape=jax.ShapeDtypeStruct((B, 3, n_pad), xyz.dtype),
        grid=grid,
        in_specs=[pl.BlockSpec((TB, TN, 3), lambda bi, ni: (bi, ni, 0))],
        out_specs=pl.BlockSpec((TB, 3, TN), lambda bi, ni: (bi, 0, ni)),
        compiler_params=pltpu.CompilerParams(
            dimension_semantics=("parallel", "parallel"),
            vmem_limit_bytes=32 * 1024 * 1024,
        ),
    )(xyz_p)

    gxyz = gxyz_p if n_pad == N else gxyz_p[:, :, :N]
    grouped_xyz = gxyz.reshape(B, 3, 1, N)  # unsqueeze(2): free reshape

    if features is not None:
        C = features.shape[1]
        # Pure metadata reshape (unsqueeze(2)) — no kernel, no HBM copy.
        grouped_features = features.reshape(B, C, 1, N)
    else:
        grouped_features = None

    return grouped_xyz, grouped_features


if __name__ == "__main__":
    # Small deterministic example shapes consistent with the module's forward.
    B, N, C = 2, 16, 4
    key = jax.random.PRNGKey(0)
    k1, k2, k3 = jax.random.split(key, 3)
    xyz = jax.random.normal(k1, (B, N, 3), dtype=jnp.float32)
    new_xyz = jax.random.normal(k2, (B, 1, 3), dtype=jnp.float32)  # ignored by forward
    features = jax.random.normal(k3, (B, C, N), dtype=jnp.float32)

    grouped_xyz, grouped_features = group_all(new_xyz, xyz, features)
    jax.block_until_ready(grouped_xyz)
    jax.block_until_ready(grouped_features)

    # Reference check against plain-JAX semantics of the PyTorch forward.
    ref_gxyz = jnp.swapaxes(xyz, 1, 2)[:, :, None, :]  # (B, 3, 1, N)
    ref_gfeat = features[:, :, None, :]                # (B, C, 1, N)
    assert grouped_xyz.shape == (B, 3, 1, N)
    assert grouped_features.shape == (B, C, 1, N)
    assert jnp.allclose(grouped_xyz, ref_gxyz)
    assert jnp.allclose(grouped_features, ref_gfeat)

    # features=None path.
    gxyz_only, gfeat_none = group_all(new_xyz, xyz, None)
    jax.block_until_ready(gxyz_only)
    assert gfeat_none is None
    assert jnp.allclose(gxyz_only, ref_gxyz)

    # Lane-aligned N (multi-step grid, batch folded into the block).
    N2 = 512
    xyz2 = jax.random.normal(k1, (B, N2, 3), dtype=jnp.float32)
    feat2 = jax.random.normal(k3, (B, C, N2), dtype=jnp.float32)
    gxyz2, gfeat2 = group_all(None, xyz2, feat2)
    jax.block_until_ready(gxyz2)
    assert jnp.allclose(gxyz2, jnp.swapaxes(xyz2, 1, 2)[:, :, None, :])
    assert jnp.allclose(gfeat2, feat2[:, :, None, :])

    # Unaligned N > 128: exercises the pad-to-128 + slice-back path.
    N3 = 1000
    xyz3 = jax.random.normal(k2, (B, N3, 3), dtype=jnp.float32)
    gxyz3, _ = group_all(None, xyz3, None)
    jax.block_until_ready(gxyz3)
    assert gxyz3.shape == (B, 3, 1, N3)
    assert jnp.allclose(gxyz3, jnp.swapaxes(xyz3, 1, 2)[:, :, None, :])

    print("KERNEL_OK")
</pallas_src>

<mosaic_0001>
module attributes {stable_mosaic.version = 11 : i64} {
  func.func @_group_xyz_kernel(%arg0: i32, %arg1: i32, %arg2: memref<1x128x3xf32, #tpu.memory_space<vmem>>, %arg3: memref<1x3x128xf32, #tpu.memory_space<vmem>>) attributes {dimension_semantics = [#tpu.dimension_semantics<parallel>, #tpu.dimension_semantics<parallel>], iteration_bounds = array<i64: 2, 1>, scalar_prefetch = 0 : i64, scratch_operands = 0 : i64, tpu.core_type = #tpu.core_type<tc>, window_params = [{transform_indices = @transform_0, window_bounds = array<i64: 1, 128, 3>}, {transform_indices = @transform_1, window_bounds = array<i64: 1, 3, 128>}]} {
    %c0 = arith.constant 0 : index
    %c0_0 = arith.constant 0 : index
    %c0_1 = arith.constant 0 : index
    %0 = vector.load %arg2[%c0, %c0_0, %c0_1] : memref<1x128x3xf32, #tpu.memory_space<vmem>>, vector<1x128x3xf32>
    %1 = vector.shape_cast %0 : vector<1x128x3xf32> to vector<128x3xf32>
    %2 = tpu.transpose %1, [1, 0] : vector<128x3xf32> -> vector<3x128xf32>
    %c0_2 = arith.constant 0 : index
    %c0_3 = arith.constant 0 : index
    %c0_4 = arith.constant 0 : index
    %3 = vector.load %arg3[%c0_2, %c0_3, %c0_4] : memref<1x3x128xf32, #tpu.memory_space<vmem>>, vector<1x3x128xf32>
    %4 = vector.shape_cast %3 : vector<1x3x128xf32> to vector<3x128xf32>
    %5 = vector.shape_cast %2 : vector<3x128xf32> to vector<1x3x128xf32>
    tpu.vector_store %arg3[%c0_2, %c0_3, %c0_4], %5 {strides = array<i32>} : memref<1x3x128xf32, #tpu.memory_space<vmem>>, vector<1x3x128xf32>,
    return
  }
  func.func @transform_0(%arg0: i32, %arg1: i32) -> (i32, i32, i32) {
    %c0_i32 = arith.constant 0 : i32
    %c0_i32_0 = arith.constant 0 : i32
    return %arg0, %arg1, %c0_i32 : i32, i32, i32
  }
  func.func @transform_1(%arg0: i32, %arg1: i32) -> (i32, i32, i32) {
    %c0_i32 = arith.constant 0 : i32
    %c0_i32_0 = arith.constant 0 : i32
    return %arg0, %c0_i32, %arg1 : i32, i32, i32
  }
}

</mosaic_0001>

<bundles_post_ra>
// kernel: tpu_custom_call.1
= control target key start
LH: loop header
LB: loop body
LE: loop exit
PB: predicated region body
PF: predicated region fallthrough
CT: control target
= control target key end

     0   :  { %s346_s6 = smov 0   ;;  %s348_s7 = smov 0   ;;  %s401_s0 = inlined_call_operand.vmem [shape: f32[2,128,3], index: 0, kind: input, shape index: {}]   ;;  %s402_s1 = inlined_call_operand.vmem [shape: f32[2,3,128], index: 1, kind: output, shape index: {}]  }
   0x1   :  { %s350_s8 = smov 0  }
   0x2 LB: > { %s23_s9 = sadd.s32 1, %s330_s7  ;;  %p281_p0 = scmp.ge.s32.totalorder %s334_s8, 1  ;;  %s334_s8 = sphi %s350_s8, %s11_s8   ;;  %s330_s7 = sphi %s348_s7, %s404_s7   ;;  %s326_s6 = sphi %s346_s6, %s403_s6  }
   0x3   : > { %p25_p1 = scmp.ge.s32.totalorder %s23_s9, 2  ;;  %p108_p2 = scmp.lt.s32.totalorder %s334_s8, 3 }
   0x5   : > { %s406_s9 = smov (%p25_p1, %s23_s9), 0  ;;  %p109_p3 = pnand %p281_p0, %p108_p2 }
   0x6   : > { %p135_p4 = scmp.lt.s32.totalorder (!%p109_p3), %s326_s6, 1 }
   0x7   : > { %112 = sbr.rel (%p109_p3) target bundleno = 148 (0x94), region = 24 }
   0xe   : > { %s408_s6 = smov (!%p135_p4, %s326_s6), 1 }
   0xf   : > { %s287_s10 = sshll.u32 %s408_s6, 7  ;;  %s284_s14 = sshll.u32 %s408_s6, 2 }
  0x10   : > { %s370_s13 = scalar_lea.vmem %s401_s0, %s287_s10  ;;  %s150_s17 = scalar_lea.vmem %s402_s1, %s284_s14 }
  0x11   : > { %v151_v0 = vld [vmem:[%s370_s13] sm:$0xff]  ;;  %v152_v1 = vld [vmem:[%s370_s13 + $0x8] sm:$0xff]  ;;  %v153_v2 = vld [vmem:[%s370_s13 + $0x10] sm:$0xff] }
  0x12   : > { %167 = vxpose.xlu0.b32.start [1/16] (narrow) %v151_v0, 8  ;;  %v154_v3 = vld [vmem:[%s370_s13 + $0x18] sm:$0xff]  ;;  %v155_v4 = vld [vmem:[%s370_s13 + $0x20] sm:$0xff]  ;;  %v156_v5 = vld [vmem:[%s370_s13 + $0x28] sm:$0xff] }
  0x13   : > { %v157_v6 = vld [vmem:[%s370_s13 + $0x30] sm:$0xff]  ;;  %v158_v7 = vld [vmem:[%s370_s13 + $0x38] sm:$0xff]  ;;  %v159_v8 = vld [vmem:[%s370_s13 + $0x40] sm:$0xff] }
  0x14   : > { %v160_v9 = vld [vmem:[%s370_s13 + $0x48] sm:$0xff]  ;;  %v161_v10 = vld [vmem:[%s370_s13 + $0x50] sm:$0xff]  ;;  %v162_v11 = vld [vmem:[%s370_s13 + $0x58] sm:$0xff] }
  0x15   : > { %v163_v12 = vld [vmem:[%s370_s13 + $0x60] sm:$0xff]  ;;  %v164_v13 = vld [vmem:[%s370_s13 + $0x68] sm:$0xff]  ;;  %v165_v14 = vld [vmem:[%s370_s13 + $0x70] sm:$0xff] }
  0x16   : > { %168 = vxpose.xlu0.b32.cont [2/16] (narrow) %v152_v1, 8  ;;  %v166_v15 = vld [vmem:[%s370_s13 + $0x78] sm:$0xff] }
  0x1a   : > { %169 = vxpose.xlu0.b32.cont [3/16] (narrow) %v153_v2, 8 }
  0x1e   : > { %170 = vxpose.xlu0.b32.cont [4/16] (narrow) %v154_v3, 8 }
  0x22   : > { %171 = vxpose.xlu0.b32.cont [5/16] (narrow) %v155_v4, 8 }
  0x26   : > { %172 = vxpose.xlu0.b32.cont [6/16] (narrow) %v156_v5, 8 }
  0x2a   : > { %173 = vxpose.xlu0.b32.cont [7/16] (narrow) %v157_v6, 8 }
  0x2e   : > { %174 = vxpose.xlu0.b32.cont [8/16] (narrow) %v158_v7, 8 }
  0x32   : > { %175 = vxpose.xlu0.b32.cont [9/16] (narrow) %v159_v8, 8 }
  0x36   : > { %176 = vxpose.xlu0.b32.cont [10/16] (narrow) %v160_v9, 8 }
  0x3a   : > { %177 = vxpose.xlu0.b32.cont [11/16] (narrow) %v161_v10, 8 }
  0x3e   : > { %178 = vxpose.xlu0.b32.cont [12/16] (narrow) %v162_v11, 8 }
  0x42   : > { %179 = vxpose.xlu0.b32.cont [13/16] (narrow) %v163_v12, 8 }
  0x46   : > { %180 = vxpose.xlu0.b32.cont [14/16] (narrow) %v164_v13, 8 }
  0x4a   : > { %181 = vxpose.xlu0.b32.cont [15/16] (narrow) %v165_v14, 8 }
  0x4e   : > { %182 = vxpose.xlu0.b32.end [16/16] (narrow) %v166_v15, 8 }
  0x92   : > { %v183_v16 = vpop.trf.xlu0 }
  0x93   : > { %199 = vst [vmem:[%s150_s17] sm:$0x7] %v183_v16 }
  0x94 PF: > { %s11_s8 = sadd.s32 1, %s334_s8   ;;  %s403_s6 = smov %s330_s7 }
  0x95   : > { %p8_p5 = scmp.ge.s32.totalorder %s11_s8, 4   ;;  %s404_s7 = smov %s406_s9 }
  0x97   :  { %10 = sbr.rel (!%p8_p5) target bundleno = 2 (0x2), region = 54 }

</bundles_post_ra>
